<compile_context>
chip_gen: v6e
topology: v6e:2x2x1
jax: 0.10.0
libtpu: 0.0.40
codegen_flags: <defaults>
</compile_context>

<pallas_src>
import functools
import math

import jax
import jax.numpy as jnp
from jax import lax
from jax.experimental import pallas as pl
from jax.experimental.pallas import tpu as pltpu


# ---------------------------------------------------------------------------
# Planning helpers (all static / trace-time Python)
# ---------------------------------------------------------------------------
_TARGET_BLOCK_BYTES = 4 * 1024 * 1024   # ~4 MiB per input operand per grid step
_MAX_ROWS = 4096                        # keep rows*128-lane blocks small enough


def _round_up(v, m):
    return (v + m - 1) // m * m


def _cdiv(a, b):
    return (a + b - 1) // b


def _flatten_rows_cols(shape):
    """Pick a free (reshape-only, contiguous) 2-D view rows x cols."""
    dims = [int(s) for s in shape]
    if len(dims) == 0:
        return 1, 1
    if len(dims) == 1:
        return 1, dims[0]
    if len(dims) == 4:
        n, c, h, w = dims
        # Natural NCHW flatten; fold channels into the lane axis if N*C is huge.
        return (n * c, h * w) if n * c <= _MAX_ROWS else (n, c * h * w)
    rows, cols = math.prod(dims[:-1]), dims[-1]
    if rows > _MAX_ROWS:
        rows, cols = dims[0], math.prod(dims[1:])
    return rows, cols


def _plan(rows, cols, itemsize):
    """Choose (tk, nk_total, nk_per_core, n_cores) for the K-tile stream."""
    rows_pad = _round_up(max(rows, 1), 8)     # VMEM sublane padding
    if cols <= 128:
        tk = cols                              # single full-width tile
    else:
        tk = max(128, (_TARGET_BLOCK_BYTES // (rows_pad * itemsize)) // 128 * 128)
        k128 = _round_up(cols, 128)
        if tk >= k128:
            # Everything fits in one tile: use (up to) two tiles anyway so the
            # "parallel" grid axis has work for both v7x TensorCores.
            tk = max(128, _round_up(_cdiv(k128, 2), 128))
    nk_total = _cdiv(cols, tk)                 # tiles that actually touch data
    n_cores = 2 if nk_total >= 2 else 1
    nk_per = _cdiv(nk_total, n_cores)
    return tk, nk_total, nk_per, n_cores


# ---------------------------------------------------------------------------
# Kernel: streamed squared-difference partial sums
# ---------------------------------------------------------------------------
def _mse_partial_kernel(k_true, tk, need_mask, x_ref, t_ref, part_ref):
    p = pl.program_id(0)          # parallel slice (megacore on v7x)
    k = pl.program_id(1)          # sequential K-tile index within the slice

    @pl.when(k == 0)
    def _init():
        part_ref[...] = jnp.zeros_like(part_ref)

    # Load in native dtype; cast after load keeps HBM/VMEM traffic narrow.
    d = x_ref[...].astype(jnp.float32) - t_ref[...].astype(jnp.float32)
    sq = d * d

    if need_mask:
        # Ragged last tile (and the fully-masked duplicate tile when the tile
        # count doesn't split evenly across the parallel axis): zero out any
        # column whose global index is >= the true width.
        tile = p * pl.num_programs(1) + k
        col = tile * tk + lax.broadcasted_iota(jnp.int32, sq.shape, 1)
        sq = jnp.where(col < k_true, sq, jnp.float32(0.0))

    # Per-step reduction to a scalar partial, accumulated into the resident
    # single-vreg output block (every element carries the same running sum).
    part_ref[...] += jnp.sum(sq)


def _content_mse_loss(x, target):
    shape = tuple(int(s) for s in x.shape)
    n_true = max(1, math.prod(shape))
    rows, cols = _flatten_rows_cols(shape)

    x2 = x.reshape(rows, cols)                 # free: contiguous reshape
    t2 = target.reshape(rows, cols)
    itemsize = max(jnp.dtype(x.dtype).itemsize, jnp.dtype(target.dtype).itemsize)

    tk, nk_total, nk_per, n_cores = _plan(rows, cols, itemsize)
    need_mask = (cols % tk != 0) or (n_cores * nk_per != nk_total)

    if n_cores * nk_per == nk_total:
        in_map = lambda p, k: (0, p * nk_per + k)
    else:
        # Clamp so the duplicate tile of an odd split never DMAs out of
        # bounds; its contribution is fully masked in-kernel.
        last_tile = nk_total - 1
        in_map = lambda p, k: (0, jnp.minimum(p * nk_per + k, last_tile))

    kernel = functools.partial(_mse_partial_kernel, cols, tk, need_mask)

    parts = pl.pallas_call(
        kernel,
        out_shape=jax.ShapeDtypeStruct((n_cores, 8, 128), jnp.float32),
        grid=(n_cores, nk_per),
        in_specs=[
            pl.BlockSpec((rows, tk), in_map),
            pl.BlockSpec((rows, tk), in_map),
        ],
        out_specs=pl.BlockSpec((1, 8, 128), lambda p, k: (p, 0, 0)),
        compiler_params=pltpu.CompilerParams(
            dimension_semantics=("parallel", "arbitrary"),
            vmem_limit_bytes=32 * 1024 * 1024,
        ),
        cost_estimate=pl.CostEstimate(
            flops=3 * rows * cols,
            transcendentals=0,
            bytes_accessed=2 * rows * cols * itemsize + n_cores * 8 * 128 * 4,
        ),
    )(x2, t2)

    # Tiny cross-slice combine + normalization by the TRUE element count.
    return jnp.sum(parts[:, 0, 0]) * jnp.float32(1.0 / n_true)


_content_mse_loss_jit = jax.jit(_content_mse_loss)


# ---------------------------------------------------------------------------
# Module wrapper (mirrors torch ContentLoss semantics)
# ---------------------------------------------------------------------------
class ContentLoss:
    """Stores the detached target at init; __call__ sets self.loss =
    mse(input, target) and returns the input unchanged."""

    def __init__(self, target):
        self.target = lax.stop_gradient(jnp.asarray(target))   # .detach()
        self.loss = None

    def __call__(self, x):
        assert x.shape == self.target.shape, "input must match target shape"
        self.loss = _content_mse_loss_jit(x, self.target)
        return x   # forward passes the input through unchanged


# ---------------------------------------------------------------------------
# Pure-JAX reference (for correctness check)
# ---------------------------------------------------------------------------
def _loss_ref(x, target):
    return jnp.mean((x.astype(jnp.float32) - target.astype(jnp.float32)) ** 2)


def _check(x, target):
    content = ContentLoss(target)
    out = content(x)
    jax.block_until_ready(out)
    loss = jax.block_until_ready(content.loss)
    ref = _loss_ref(x, target)
    assert out.shape == x.shape and bool(jnp.allclose(out, x))
    assert bool(jnp.allclose(loss, ref, rtol=1e-4, atol=1e-6)), (
        f"pallas={loss} ref={ref} shape={x.shape}"
    )


if __name__ == "__main__":
    key = jax.random.PRNGKey(0)
    k1, k2, k3, k4, k5, k6 = jax.random.split(key, 6)

    # Main small NCHW case (aligned tiles, 2-way parallel split).
    a, b, c, d = 2, 4, 16, 16
    target = jax.random.normal(k1, (a, b, c, d), dtype=jnp.float32)
    x = jax.random.normal(k2, (a, b, c, d), dtype=jnp.float32)
    _check(x, target)

    # Ragged case: last tile masked in-kernel (no wrapper pad).
    t_r = jax.random.normal(k3, (1, 2, 10, 30), dtype=jnp.float32)
    x_r = jax.random.normal(k4, (1, 2, 10, 30), dtype=jnp.float32)
    _check(x_r, t_r)

    # Odd tile count: exercises the clamped index_map + fully-masked
    # duplicate tile on the 2-way parallel split.
    t_o = jax.random.normal(k5, (2, 262400), dtype=jnp.float32)
    x_o = jax.random.normal(k6, (2, 262400), dtype=jnp.float32)
    _check(x_o, t_o)

    print("KERNEL_OK")
</pallas_src>

<mosaic_0001>
module attributes {stable_mosaic.version = 11 : i64} {
  func.func @_mse_partial_kernel(%arg0: i32, %arg1: i32, %arg2: memref<8x128xf32, #tpu.memory_space<vmem>>, %arg3: memref<8x128xf32, #tpu.memory_space<vmem>>, %arg4: memref<1x8x128xf32, #tpu.memory_space<vmem>>) attributes {dimension_semantics = [#tpu.dimension_semantics<parallel>, #tpu.dimension_semantics<arbitrary>], iteration_bounds = array<i64: 2, 1>, scalar_prefetch = 0 : i64, scratch_operands = 0 : i64, tpu.core_type = #tpu.core_type<tc>, window_params = [{transform_indices = @transform_0, window_bounds = array<i64: 8, 128>}, {transform_indices = @transform_1, window_bounds = array<i64: 8, 128>}, {transform_indices = @transform_2, window_bounds = array<i64: 1, 8, 128>}]} {
    %c0_i32 = arith.constant 0 : i32
    %0 = arith.cmpi eq, %arg1, %c0_i32 : i32
    %1 = arith.extui %0 : i1 to i32
    %c0_i32_0 = arith.constant 0 : i32
    %2 = arith.cmpi ne, %1, %c0_i32_0 : i32
    scf.if %2 {
      %cst_10 = arith.constant 0.000000e+00 : f32
      %15 = vector.broadcast %cst_10 : f32 to vector<1x8x128xf32>
      %c0_11 = arith.constant 0 : index
      %c0_12 = arith.constant 0 : index
      %c0_13 = arith.constant 0 : index
      %16 = vector.load %arg4[%c0_11, %c0_12, %c0_13] : memref<1x8x128xf32, #tpu.memory_space<vmem>>, vector<1x8x128xf32>
      tpu.vector_store %arg4[%c0_11, %c0_12, %c0_13], %15 {strides = array<i32>} : memref<1x8x128xf32, #tpu.memory_space<vmem>>, vector<1x8x128xf32>,
    } else {
    }
    %c0 = arith.constant 0 : index
    %c0_1 = arith.constant 0 : index
    %3 = vector.load %arg2[%c0, %c0_1] : memref<8x128xf32, #tpu.memory_space<vmem>>, vector<8x128xf32>
    %c0_2 = arith.constant 0 : index
    %c0_3 = arith.constant 0 : index
    %4 = vector.load %arg3[%c0_2, %c0_3] : memref<8x128xf32, #tpu.memory_space<vmem>>, vector<8x128xf32>
    %5 = arith.subf %3, %4 : vector<8x128xf32>
    %6 = arith.mulf %5, %5 : vector<8x128xf32>
    %c0_4 = arith.constant 0 : index
    %c0_5 = arith.constant 0 : index
    %c0_6 = arith.constant 0 : index
    %7 = vector.load %arg4[%c0_4, %c0_5, %c0_6] : memref<1x8x128xf32, #tpu.memory_space<vmem>>, vector<1x8x128xf32>
    %8 = vector.shape_cast %6 : vector<8x128xf32> to vector<1x8x128xf32>
    %cst = arith.constant dense<0.000000e+00> : vector<1xf32>
    %9 = vector.multi_reduction <add>, %8, %cst [1, 2] : vector<1x8x128xf32> to vector<1xf32>
    %10 = vector.shape_cast %9 : vector<1xf32> to vector<1x1x1xf32>
    %11 = vector.extract %10[0, 0, 0] : f32 from vector<1x1x1xf32>
    %12 = vector.broadcast %11 : f32 to vector<1x8x128xf32>
    %13 = arith.addf %7, %12 : vector<1x8x128xf32>
    %c0_7 = arith.constant 0 : index
    %c0_8 = arith.constant 0 : index
    %c0_9 = arith.constant 0 : index
    %14 = vector.load %arg4[%c0_7, %c0_8, %c0_9] : memref<1x8x128xf32, #tpu.memory_space<vmem>>, vector<1x8x128xf32>
    tpu.vector_store %arg4[%c0_7, %c0_8, %c0_9], %13 {strides = array<i32>} : memref<1x8x128xf32, #tpu.memory_space<vmem>>, vector<1x8x128xf32>,
    return
  }
  func.func @transform_0(%arg0: i32, %arg1: i32) -> (i32, i32) {
    %c1_i32 = arith.constant 1 : i32
    %0 = arith.muli %arg0, %c1_i32 : i32
    %1 = arith.addi %0, %arg1 : i32
    %c0_i32 = arith.constant 0 : i32
    %c0_i32_0 = arith.constant 0 : i32
    return %c0_i32, %1 : i32, i32
  }
  func.func @transform_1(%arg0: i32, %arg1: i32) -> (i32, i32) {
    %c1_i32 = arith.constant 1 : i32
    %0 = arith.muli %arg0, %c1_i32 : i32
    %1 = arith.addi %0, %arg1 : i32
    %c0_i32 = arith.constant 0 : i32
    %c0_i32_0 = arith.constant 0 : i32
    return %c0_i32, %1 : i32, i32
  }
  func.func @transform_2(%arg0: i32, %arg1: i32) -> (i32, i32, i32) {
    %c0_i32 = arith.constant 0 : i32
    %c0_i32_0 = arith.constant 0 : i32
    %c0_i32_1 = arith.constant 0 : i32
    return %arg0, %c0_i32, %c0_i32_0 : i32, i32, i32
  }
}

</mosaic_0001>

<bundles_post_ra>
// kernel: _content_mse_loss.1
= control target key start
LH: loop header
LB: loop body
LE: loop exit
PB: predicated region body
PF: predicated region fallthrough
CT: control target
= control target key end

     0   :  { %s353_s9 = smov 0   ;;  %s355_s10 = smov 0   ;;  %s386_s0 = inlined_call_operand.vmem [shape: f32[8,256], index: 0, kind: input, shape index: {}]   ;;  %s387_s1 = inlined_call_operand.vmem [shape: f32[8,256], index: 1, kind: input, shape index: {}]   ;;  %s388_s2 = inlined_call_operand.vmem [shape: f32[2,8,128], index: 2, kind: output, shape index: {}]  }
   0x1   :  { %s357_s11 = smov 0  }
   0x2 LB: > { %s24_s12 = sadd.s32 1, %s332_s10  ;;  %p281_p0 = scmp.ge.s32.totalorder %s336_s11, 1  ;;  %s336_s11 = sphi %s357_s11, %s12_s11   ;;  %s332_s10 = sphi %s355_s10, %s390_s10   ;;  %s328_s9 = sphi %s353_s9, %s389_s9  }
   0x3   : > { %p26_p1 = scmp.ge.s32.totalorder %s24_s12, 2  ;;  %p140_p2 = scmp.lt.s32.totalorder %s336_s11, 3 }
   0x5   : > { %s392_s12 = smov (%p26_p1, %s24_s12), 0  ;;  %p141_p3 = pnand %p281_p0, %p140_p2 }
   0x6   : > { %p167_p4 = scmp.lt.s32.totalorder (!%p141_p3), %s328_s9, 1 }
   0x7   : > { %144 = sbr.rel (%p141_p3) target bundleno = 223 (0xdf), region = 28 }
   0xc   : > { %s394_s9 = smov (!%p167_p4, %s328_s9), 1 }
   0xd   : > { %s282_s13 = sshll.u32 %s394_s9, 3 }
   0xe   : > { %s170_s16 = scalar_lea.vmem %s386_s0, %s282_s13  ;;  %s176_s19 = scalar_lea.vmem %s387_s1, %s282_s13 }
   0xf   : > { %v187_v0 = vld [vmem:[%s170_s16] sm:$0xff]  ;;  %s181_s23 = scalar_lea.vmem %s388_s2, %s282_s13 }
  0x10   : > { %v188_v1 = vld [vmem:[%s176_s19] sm:$0xff] }
  0x11   : > { %v189_v2 = vsub.f32 %v187_v0, %v188_v1 }
  0x13   : > { %v190_v3 = vmul.f32 %v189_v2, %v189_v2 }
  0x15   : > { %192 = vadd.xlane.f32.xlu0 %v190_v3 }
  0x9e   : > { %v193_v4 = vpop.xlane.xlu0 %192 }
  0x9f   : > { %v194_v5 = vrot.slane %v193_v4, 4 }
  0xa1   : > { %v195_v6 = vadd.f32 %v194_v5, %v193_v4 }
  0xa3   : > { %v196_v7 = vrot.slane %v195_v6, 2 }
  0xa5   : > { %v197_v8 = vadd.f32 %v196_v7, %v195_v6 }
  0xa7   : > { %v198_v9 = vrot.slane %v197_v8, 1 }
  0xa9   : > { %v199_v10 = vadd.f32 %v198_v9, %v197_v8 }
  0xab   : > { %287 = vpush %v199_v10 }
  0xdc   : > { %s288_s20 = spop %287 }
  0xdd   : > { %v201_v11 = vstv %s288_s20 }
  0xde   : > { %203 = vst [vmem:[%s181_s23] sm:$0xff] %v201_v11 }
  0xdf PF: > { %s12_s11 = sadd.s32 1, %s336_s11   ;;  %s389_s9 = smov %s332_s10 }
  0xe0   : > { %p9_p5 = scmp.ge.s32.totalorder %s12_s11, 4   ;;  %s390_s10 = smov %s392_s12 }
  0xe2   :  { %11 = sbr.rel (!%p9_p5) target bundleno = 2 (0x2), region = 65 }

</bundles_post_ra>
